<compile_context>
chip_gen: v6e
topology: v6e:2x2x1
jax: 0.10.0
libtpu: 0.0.40
codegen_flags: <defaults>
</compile_context>

<pallas_src>
import jax
import jax.numpy as jnp
from jax.experimental import pallas as pl
from jax.experimental.pallas import tpu as pltpu


def _round_up(x, m):
    return ((x + m - 1) // m) * m


def _feature_selector_kernel(x_ref, gate_ref, o_ref):
    # x_ref:    (TB, D) activations, batch-tiled
    # gate_ref: (1, D)  fully-folded hard-sigmoid gate (f32), resident across all tiles
    # Single broadcast multiply in the activation dtype (bf16 VALU on v6e/v7x; the cast of
    # the tiny (1, D) gate is negligible and a no-op for f32 activations).
    o_ref[...] = x_ref[...] * gate_ref[...].astype(x_ref.dtype)


def feature_selector_forward(prev_x, mu, noise, sigma, training):
    """prev_x: (B, D), mu/noise: (D,), sigma: python float, training: python bool.

    Returns the gated activations with the same shape/dtype as prev_x.
    """
    B, D = prev_x.shape
    out_dtype = prev_x.dtype
    itemsize = jnp.dtype(out_dtype).itemsize

    # ---- host-side folding: the whole gate is a tiny (1, D) f32 vector ----------------
    mu_f32 = mu.astype(jnp.float32)
    if training:
        z = mu_f32 + jnp.float32(sigma) * noise.astype(jnp.float32)
    else:
        # Drop the noise term entirely in eval mode (also avoids any 0 * inf -> NaN).
        z = mu_f32
    gate = jnp.clip(z + 0.5, 0.0, 1.0).reshape(1, D)

    # ---- generation-aware VMEM budget --------------------------------------------------
    try:
        vmem_capacity = int(pltpu.get_tpu_info().vmem_capacity_bytes)
    except Exception:
        vmem_capacity = 64 * 1024 * 1024  # conservative (v7x per-TC), safe everywhere
    # Live double-buffered footprint budget: ~30% of physical VMEM.
    vmem_budget = int(0.3 * vmem_capacity)

    # ---- tile sizing (rows) -------------------------------------------------------------
    # Sublane multiple for the activation dtype: 8 for f32, 16 for bf16, 32 for int8/fp8.
    sublane = max(8, 32 // itemsize)

    # Bytes per batch row held live: double-buffered input + double-buffered output.
    bytes_per_row = 4 * D * itemsize
    rows_budget = max(sublane, (vmem_budget // max(1, bytes_per_row)) // sublane * sublane)

    # Target ~8 MiB per input tile: well past the >=1-2 MiB knee where tiled elementwise
    # kernels reach ~85% of the HBM roofline, amortizing the ~0.35us/step overhead.
    target_tile_bytes = 8 * 1024 * 1024
    rows_target = max(sublane, (target_tile_bytes // max(1, D * itemsize)) // sublane * sublane)

    # Guarantee >= ~4 grid steps (when B allows) so the "parallel" batch axis can shard
    # across v7x's two TensorCores instead of leaving one idle.
    rows_for_splits = _round_up(pl.cdiv(B, 4), sublane)

    TB = min(rows_budget, rows_target, rows_for_splits, _round_up(B, sublane))
    TB = max(sublane, TB)

    grid = (pl.cdiv(B, TB),)  # ragged last block: Pallas masks its output writes

    # Explicit scoped-VMEM limit so the intended tile survives v5e's 16 MiB default.
    live_bytes = 4 * TB * D * itemsize + 2 * D * 4
    vmem_limit_bytes = int(min(vmem_capacity, max(2 * live_bytes, 16 * 1024 * 1024)))

    out = pl.pallas_call(
        _feature_selector_kernel,
        out_shape=jax.ShapeDtypeStruct((B, D), out_dtype),
        grid=grid,
        in_specs=[
            pl.BlockSpec((TB, D), lambda i: (i, 0)),   # prev_x, batch-tiled
            pl.BlockSpec((1, D), lambda i: (0, 0)),    # folded gate (resident)
        ],
        out_specs=pl.BlockSpec((TB, D), lambda i: (i, 0)),
        compiler_params=pltpu.CompilerParams(
            dimension_semantics=("parallel",),
            vmem_limit_bytes=vmem_limit_bytes,
        ),
    )(prev_x, gate)

    return out


# TODO(synk): regularizer()/get_internal_loss() (Gaussian-CDF penalty on mu) are training-loss
# helpers, not part of the forward pass; they are intentionally not implemented as kernels.


if __name__ == "__main__":
    key = jax.random.PRNGKey(0)
    k_x, k_mu, k_noise = jax.random.split(key, 3)

    batch, input_dim = 8, 32
    sigma = 0.5

    # Deterministic "parameter init" mirroring the module's __init__:
    #   mu    = 0.01 * randn(input_dim)
    #   noise = randn(input_dim)   (resampled each training-mode forward; fixed here)
    x = jax.random.normal(k_x, (batch, input_dim), dtype=jnp.float32)
    mu = 0.01 * jax.random.normal(k_mu, (input_dim,), dtype=jnp.float32)
    noise = jax.random.normal(k_noise, (input_dim,), dtype=jnp.float32)

    # Run kernel in both eval and train modes.
    out_eval = feature_selector_forward(x, mu, noise, sigma, training=False)
    out_train = feature_selector_forward(x, mu, noise, sigma, training=True)
    jax.block_until_ready(out_eval)
    jax.block_until_ready(out_train)

    # Pure-JAX reference check.
    def ref(x, mu, noise, sigma, training):
        z = mu + sigma * noise * (1.0 if training else 0.0)
        gate = jnp.clip(z + 0.5, 0.0, 1.0)
        return x * gate[None, :]

    ref_eval = ref(x, mu, noise, sigma, False)
    ref_train = ref(x, mu, noise, sigma, True)
    assert out_eval.shape == x.shape and out_train.shape == x.shape
    assert jnp.allclose(out_eval, ref_eval, atol=1e-6, rtol=1e-6)
    assert jnp.allclose(out_train, ref_train, atol=1e-6, rtol=1e-6)

    print("KERNEL_OK")
</pallas_src>

<mosaic_0001>
module attributes {stable_mosaic.version = 11 : i64} {
  func.func @_feature_selector_kernel(%arg0: i32, %arg1: memref<8x32xf32, #tpu.memory_space<vmem>>, %arg2: memref<1x32xf32, #tpu.memory_space<vmem>>, %arg3: memref<8x32xf32, #tpu.memory_space<vmem>>) attributes {dimension_semantics = [#tpu.dimension_semantics<parallel>], iteration_bounds = array<i64: 1>, scalar_prefetch = 0 : i64, scratch_operands = 0 : i64, tpu.core_type = #tpu.core_type<tc>, window_params = [{transform_indices = @transform_0, window_bounds = array<i64: 8, 32>}, {pipeline_mode = #tpu.pipeline_mode<synchronous>, transform_indices = @transform_1, window_bounds = array<i64: 1, 32>}, {transform_indices = @transform_2, window_bounds = array<i64: 8, 32>}]} {
    %c0 = arith.constant 0 : index
    %c0_0 = arith.constant 0 : index
    %0 = vector.load %arg1[%c0, %c0_0] : memref<8x32xf32, #tpu.memory_space<vmem>>, vector<8x32xf32>
    %c0_1 = arith.constant 0 : index
    %c0_2 = arith.constant 0 : index
    %1 = vector.load %arg2[%c0_1, %c0_2] : memref<1x32xf32, #tpu.memory_space<vmem>>, vector<1x32xf32>
    %2 = vector.broadcast %1 : vector<1x32xf32> to vector<8x32xf32>
    %3 = arith.mulf %0, %2 : vector<8x32xf32>
    %c0_3 = arith.constant 0 : index
    %c0_4 = arith.constant 0 : index
    %4 = vector.load %arg3[%c0_3, %c0_4] : memref<8x32xf32, #tpu.memory_space<vmem>>, vector<8x32xf32>
    tpu.vector_store %arg3[%c0_3, %c0_4], %3 {strides = array<i32>} : memref<8x32xf32, #tpu.memory_space<vmem>>, vector<8x32xf32>,
    return
  }
  func.func @transform_0(%arg0: i32) -> (i32, i32) {
    %c0_i32 = arith.constant 0 : i32
    %c0_i32_0 = arith.constant 0 : i32
    return %arg0, %c0_i32 : i32, i32
  }
  func.func @transform_1(%arg0: i32) -> (i32, i32) {
    %c0_i32 = arith.constant 0 : i32
    %c0_i32_0 = arith.constant 0 : i32
    %c0_i32_1 = arith.constant 0 : i32
    return %c0_i32, %c0_i32_0 : i32, i32
  }
  func.func @transform_2(%arg0: i32) -> (i32, i32) {
    %c0_i32 = arith.constant 0 : i32
    %c0_i32_0 = arith.constant 0 : i32
    return %arg0, %c0_i32 : i32, i32
  }
}

</mosaic_0001>

<bundles_post_ra>
// kernel: tpu_custom_call.1
= control target key start
LH: loop header
LB: loop body
LE: loop exit
PB: predicated region body
PF: predicated region fallthrough
CT: control target
= control target key end

     0   :  { %7 = vsyncpa [#allocation3], 0  ;;  %s123_s0 = inlined_call_operand.hbm [shape: f32[8,32], index: 0, kind: input, shape index: {}]   ;;  %s124_s1 = inlined_call_operand.vmem [shape: f32[1,32], index: 1, kind: input, shape index: {}]   ;;  %s125_s2 = inlined_call_operand.hbm [shape: f32[8,32], index: 2, kind: output, shape index: {}]  }
   0x1   :  { %8 = vsyncpa [#allocation4], 0  ;;  %s97_s9 = smov [#allocation2]  }
   0x2   :  { %s15_s10 = sshll.u32 %s97_s9, 4  ;;  %s16_s10 = int_to_ptr.vmem [resolvable:$true] %s15_s10 }
   0x3   :  { %s61_s11 = scalar_lea.vmem %s16_s10, 128  ;;  %p66_p1 = scmp.lt.s32.totalorder %s16_s10, %s16_s10 }
   0x4   :  { %p62_p0 = scmp.ne.s32.totalorder %s16_s10, %s61_s11  ;;  %p67_p2 = scmp.lt.s32.totalorder %s61_s11, %s61_s11 }
   0x6   :  { %p68_p3 = por %p67_p2, %p66_p1 }
   0x8   :  { %p69_p4 = pnand %p68_p3, %p62_p0 }
   0xa   :  { %72 = shalt.err (!%p69_p4)
}
   0xb   :  { %18 = dma.hbm_to_vmem [thread:$0]  %s123_s0, 128, %s16_s10, [#allocation3]  }
   0xc   :  { %93 = dma.done.wait [#allocation3], 128  }
   0xd   :  { %94 = vsyncadd [#allocation3], 4294967168  ;;  %s98_s14 = smov [#allocation5]   ;;  %v24_v0 = vld [vmem:[#allocation2] sm:$0xff]  ;;  %vm33_vm0 = vcmask 261120  }
   0xe   :  { %s41_s15 = sshll.u32 %s98_s14, 4  ;;  %v50_v1 = vld [vmem:[%s124_s1] ss:$0 sm:$0xff]  ;;  %s42_s15 = int_to_ptr.vmem [resolvable:$true] %s41_s15 }
   0xf   :  { %v32_v2 = vmul.f32 %v50_v1, %v24_v0  ;;  %s73_s18 = scalar_lea.vmem %s42_s15, 128  ;;  %p78_p6 = scmp.lt.s32.totalorder %s42_s15, %s42_s15 }
  0x10   :  { %p74_p5 = scmp.ne.s32.totalorder %s42_s15, %s73_s18  ;;  %p79_p7 = scmp.lt.s32.totalorder %s73_s18, %s73_s18 }
  0x11   :  { %34 = vst.msk [vmem:[#allocation5] sm:$0xff] %vm33_vm0, %v32_v2 }
  0x12   :  { %p80_p8 = por %p79_p7, %p78_p6 }
  0x14   :  { %p81_p9 = pnand %p80_p8, %p74_p5 }
  0x16   :  { %84 = shalt.err (!%p81_p9)
}
  0x17   :  { %44 = dma.vmem_to_hbm [thread:$0]  %s42_s15, 128, %s125_s2, [#allocation4]  }
  0x18   :  { %95 = dma.done.wait [#allocation4], 128  }
  0x19   :  { %96 = vsyncadd [#allocation4], 4294967168 }
  0x1a   :  { %48 = vsyncpa [#allocation3], 1 }
  0x1b   :  { %49 = vsyncpa [#allocation4], 1 }

</bundles_post_ra>
